<compile_context>
chip_gen: v7x
topology: tpu7x:2x2x1
jax: 0.10.0
libtpu: 0.0.40
codegen_flags: <defaults>
</compile_context>

<pallas_src>
import numpy as np
import jax
import jax.numpy as jnp
from jax.experimental import pallas as pl
from jax.experimental.pallas import tpu as pltpu

C1, C2, KS = 30, 60, 3   # channels_1, channels_2, conv kernel size (from the module)


# ---------------------------------------------------------------------------
# Fused Pallas kernel (one batch tile per grid step)
# ---------------------------------------------------------------------------
def convnet_kernel(p1_ref, w1_ref, w2_ref, wf1_ref, c_ref, o_ref):
    """conv1 -> 2x2 pool -> relu -> conv2 -> 2x2 pool -> relu -> fc1 -> relu -> fc2.

    p1_ref : (1, 4*36*nb, 18) bf16  conv1 im2col; row = d*36*nb + (y*6+x)*nb + n
                                    (d = 2x2-pool offset, (y,x) = pooled 6x6 pos)
    w1_ref : (18, C1)   bf16        conv1 weight, rows ordered (kh, kw, cin)
    w2_ref : (9*C1, C2) bf16        conv2 weight, rows ((kh*3+kw)*C1 + cin)
    wf1_ref: (4*C2, H)  bf16        fc1 weight, rows (p*C2 + co); NCHW flatten folded
    c_ref  : (8+H, 128) f32         packed constants: rows 0..3 = b1/b2/bf1/bf2,
                                    rows 8..8+H-1 = fc2 weight (H, 2)
    o_ref  : (nb, 2)    f32         logits for this batch tile
    """
    nb = o_ref.shape[0]
    g1 = 36 * nb                      # conv1 pooled pixels per tile
    hdim = wf1_ref.shape[1]

    b1 = c_ref[0:1, 0:C1]
    b2 = c_ref[1:2, 0:C2]
    bf1 = c_ref[2:3, 0:hdim]
    bf2 = c_ref[3:4, 0:2]
    wf2 = c_ref[8:8 + hdim, 0:2]

    # ---- conv1: one bf16 matmul over all 4 pool offsets, pool = max of slabs --
    acc1 = jnp.dot(p1_ref[0], w1_ref[...], preferred_element_type=jnp.float32)
    m1 = jnp.maximum(jnp.maximum(acc1[0:g1], acc1[g1:2 * g1]),
                     jnp.maximum(acc1[2 * g1:3 * g1], acc1[3 * g1:4 * g1]))
    # per-channel bias commutes with max; relu after pool matches the module
    h1 = jnp.maximum(m1 + b1, 0.0)                 # (36*nb, C1), rows (y, x, n)

    # ---- conv2: in-VMEM im2col from 9 shifted windows of h1, ONE K=270 dot ----
    cols = []
    for kh in range(KS):
        for kw in range(KS):
            rows = [h1[((y + kh) * 6 + kw) * nb:((y + kh) * 6 + kw + 4) * nb]
                    for y in range(4)]
            cols.append(jnp.concatenate(rows, axis=0))          # (16*nb, C1)
    im2 = jnp.concatenate(cols, axis=1).astype(jnp.bfloat16)    # (16*nb, 9*C1)
    a2 = jnp.dot(im2, w2_ref[...], preferred_element_type=jnp.float32)  # (16*nb, C2)

    # ---- 2x2 maxpool over the 4x4 conv2 grid (rows (y, x, n)), bias, relu -----
    q = 4 * nb
    top = jnp.maximum(a2[0:q], a2[q:2 * q])                 # y in {0,1} -> yp=0
    bot = jnp.maximum(a2[2 * q:3 * q], a2[3 * q:4 * q])     # y in {2,3} -> yp=1
    pooled = [jnp.maximum(top[0:nb], top[nb:2 * nb]),               # (yp,xp)=(0,0)
              jnp.maximum(top[2 * nb:3 * nb], top[3 * nb:4 * nb]),  # (0,1)
              jnp.maximum(bot[0:nb], bot[nb:2 * nb]),               # (1,0)
              jnp.maximum(bot[2 * nb:3 * nb], bot[3 * nb:4 * nb])]  # (1,1)
    # NCHW flatten is just a lane-concat here (the permutation is folded in wf1)
    feat = jnp.concatenate([jnp.maximum(v + b2, 0.0) for v in pooled],
                           axis=1).astype(jnp.bfloat16)     # (nb, 4*C2)

    # ---- fc1 (single K=240 matmul) + relu, then fc2 ---------------------------
    hid = jnp.maximum(
        jnp.dot(feat, wf1_ref[...], preferred_element_type=jnp.float32) + bf1, 0.0)
    o_ref[...] = jnp.dot(hid, wf2, preferred_element_type=jnp.float32) + bf2


# ---------------------------------------------------------------------------
# Wrapper glue (plain JAX): conv1 im2col + one-time parameter re-layout
# ---------------------------------------------------------------------------
def _conv1_patches(x_nchw, block):
    """conv1 im2col, bf16, tiled for the batch grid.

    Returns (T, 4*36*block, 18): row = d*36*block + (y*6+x)*block + n,
    feature = (kh*3+kw)*2 + cin (matches the folded conv1 weight layout).
    """
    n, c, _, _ = x_nchw.shape
    t = n // block
    x = jnp.transpose(x_nchw, (0, 2, 3, 1))                        # (N, 14, 14, 2)
    pat = jnp.stack([x[:, kh:kh + 12, kw:kw + 12, :]
                     for kh in range(KS) for kw in range(KS)], axis=3)  # (N,12,12,9,2)
    pat = pat.reshape(t, block, 6, 2, 6, 2, KS * KS * c)           # (t,n,y,di,x,dj,F)
    pat = pat.transpose(0, 3, 5, 2, 4, 1, 6)                       # (t,di,dj,y,x,n,F)
    return pat.reshape(t, 4 * 36 * block, KS * KS * c).astype(jnp.bfloat16)


def prepare_params(params):
    """One-time, batch-independent re-layout of PyTorch-style parameters."""
    hdim = params["fc1_w"].shape[0]
    assert hdim <= 128, "packed-constant layout assumes nb_hidden <= 128"

    w1 = params["conv1_w"].transpose(2, 3, 1, 0).reshape(KS * KS * 2, C1)
    w2 = params["conv2_w"].transpose(2, 3, 1, 0).reshape(KS * KS * C1, C2)
    # fold the NCHW flatten (torch feature = co*4 + p) into fc1: row = p*C2 + co
    wf1 = params["fc1_w"].reshape(hdim, C2, 4).transpose(2, 1, 0).reshape(4 * C2, hdim)

    cpack = np.zeros((8 + hdim, 128), np.float32)
    cpack[0, :C1] = np.asarray(params["conv1_b"])
    cpack[1, :C2] = np.asarray(params["conv2_b"])
    cpack[2, :hdim] = np.asarray(params["fc1_b"])
    cpack[3, :2] = np.asarray(params["fc2_b"])
    cpack[8:8 + hdim, :2] = np.asarray(params["fc2_w"]).T
    return {
        "w1": w1.astype(jnp.bfloat16),
        "w2": w2.astype(jnp.bfloat16),
        "wf1": wf1.astype(jnp.bfloat16),
        "cpack": jnp.asarray(cpack),
    }


def convnet_forward(x_nchw, kp, block_batch=None):
    """Equivalent of ConvNet.forward (use_batch_norm=False). Returns (logits, None)."""
    n, cin, hh, ww = x_nchw.shape
    assert (cin, hh, ww) == (2, 14, 14), "ConvNet.forward implies a 2x14x14 input"
    if block_batch is None:
        block_batch = n if n <= 8 else 8
    assert n % block_batch == 0 and (block_batch == n or block_batch % 8 == 0), \
        "batch tile must divide the batch and be 8-aligned (or be the whole batch)"
    t = n // block_batch
    hdim = kp["wf1"].shape[1]

    p1 = _conv1_patches(x_nchw, block_batch)          # (T, 4*36*block, 18) bf16
    rows = 4 * 36 * block_batch

    flops = (2 * 144 * n * 18 * C1                    # conv1
             + 2 * 16 * n * (KS * KS * C1) * C2       # conv2
             + 2 * n * (4 * C2) * hdim                # fc1
             + 2 * n * hdim * 2)                      # fc2
    bytes_accessed = (p1.size * 2 + kp["w1"].size * 2 + kp["w2"].size * 2
                      + kp["wf1"].size * 2 + kp["cpack"].size * 4 + n * 2 * 4)

    out = pl.pallas_call(
        convnet_kernel,
        out_shape=jax.ShapeDtypeStruct((n, 2), jnp.float32),
        grid=(t,),
        in_specs=[
            pl.BlockSpec((1, rows, KS * KS * 2), lambda i: (i, 0, 0)),
            pl.BlockSpec((KS * KS * 2, C1), lambda i: (0, 0)),
            pl.BlockSpec((KS * KS * C1, C2), lambda i: (0, 0)),
            pl.BlockSpec((4 * C2, hdim), lambda i: (0, 0)),
            pl.BlockSpec((8 + hdim, 128), lambda i: (0, 0)),
        ],
        out_specs=pl.BlockSpec((block_batch, 2), lambda i: (i, 0)),
        compiler_params=pltpu.CompilerParams(dimension_semantics=("parallel",)),
        cost_estimate=pl.CostEstimate(flops=flops, transcendentals=0,
                                      bytes_accessed=bytes_accessed),
    )(p1, kp["w1"], kp["w2"], kp["wf1"], kp["cpack"])
    return out, None


# ---------------------------------------------------------------------------
# Deterministic parameter init (PyTorch-style U(-1/sqrt(fan_in), 1/sqrt(fan_in)))
# ---------------------------------------------------------------------------
def init_params(key, nb_hidden=100):
    def unif(k, shape, fan_in):
        bound = 1.0 / jnp.sqrt(fan_in)
        return jax.random.uniform(k, shape, jnp.float32, -bound, bound)

    ks = jax.random.split(key, 8)
    return {
        "conv1_w": unif(ks[0], (C1, 2, KS, KS), 2 * KS * KS),
        "conv1_b": unif(ks[1], (C1,), 2 * KS * KS),
        "conv2_w": unif(ks[2], (C2, C1, KS, KS), C1 * KS * KS),
        "conv2_b": unif(ks[3], (C2,), C1 * KS * KS),
        "fc1_w":   unif(ks[4], (nb_hidden, C2 * 4), C2 * 4),
        "fc1_b":   unif(ks[5], (nb_hidden,), C2 * 4),
        "fc2_w":   unif(ks[6], (2, nb_hidden), nb_hidden),
        "fc2_b":   unif(ks[7], (2,), nb_hidden),
    }


# ---------------------------------------------------------------------------
# Pure-JAX f32 reference (for a correctness sanity check)
# ---------------------------------------------------------------------------
def reference_forward(x, params):
    def conv(x, w, b):
        y = jax.lax.conv_general_dilated(
            x, w, (1, 1), "VALID", dimension_numbers=("NCHW", "OIHW", "NCHW"))
        return y + b[None, :, None, None]

    def pool(x):
        return jax.lax.reduce_window(
            x, -jnp.inf, jax.lax.max, (1, 1, 2, 2), (1, 1, 2, 2), "VALID")

    y = jnp.maximum(pool(conv(x, params["conv1_w"], params["conv1_b"])), 0.0)
    y = jnp.maximum(pool(conv(y, params["conv2_w"], params["conv2_b"])), 0.0)
    y = y.reshape(x.shape[0], -1)
    y = jnp.maximum(y @ params["fc1_w"].T + params["fc1_b"], 0.0)
    return y @ params["fc2_w"].T + params["fc2_b"]


if __name__ == "__main__":
    key = jax.random.PRNGKey(0)
    k_x, k_p = jax.random.split(key)

    # batch=2, channels=2, spatial=14x14 (the only spatial size consistent with
    # the view(-1, channels_2 * 4) in forward).
    x = jax.random.normal(k_x, (2, 2, 14, 14), dtype=jnp.float32)
    params = init_params(k_p, nb_hidden=100)
    kparams = prepare_params(params)           # one-time, batch-independent prep

    fwd = jax.jit(convnet_forward)
    out, aux = fwd(x, kparams)
    out = jax.block_until_ready(out)
    assert aux is None and out.shape == (2, 2)

    ref = jax.block_until_ready(reference_forward(x, params))
    # bf16 streamed operands with f32 accumulation -> loose-ish tolerance vs f32 ref
    assert jnp.allclose(out, ref, atol=3e-2, rtol=3e-2), (out, ref)

    print("KERNEL_OK")
</pallas_src>

<mosaic_0001>
module attributes {stable_mosaic.version = 11 : i64} {
  func.func @convnet_kernel(%arg0: i32, %arg1: memref<1x288x18xbf16, #tpu.memory_space<vmem>>, %arg2: memref<18x30xbf16, #tpu.memory_space<vmem>>, %arg3: memref<270x60xbf16, #tpu.memory_space<vmem>>, %arg4: memref<240x100xbf16, #tpu.memory_space<vmem>>, %arg5: memref<108x128xf32, #tpu.memory_space<vmem>>, %arg6: memref<2x2xf32, #tpu.memory_space<vmem>>) attributes {dimension_semantics = [#tpu.dimension_semantics<parallel>], iteration_bounds = array<i64: 1>, scalar_prefetch = 0 : i64, scratch_operands = 0 : i64, tpu.core_type = #tpu.core_type<tc>, window_params = [{transform_indices = @transform_0, window_bounds = array<i64: 1, 288, 18>}, {pipeline_mode = #tpu.pipeline_mode<synchronous>, transform_indices = @transform_1, window_bounds = array<i64: 18, 30>}, {pipeline_mode = #tpu.pipeline_mode<synchronous>, transform_indices = @transform_2, window_bounds = array<i64: 270, 60>}, {pipeline_mode = #tpu.pipeline_mode<synchronous>, transform_indices = @transform_3, window_bounds = array<i64: 240, 100>}, {pipeline_mode = #tpu.pipeline_mode<synchronous>, transform_indices = @transform_4, window_bounds = array<i64: 108, 128>}, {transform_indices = @transform_5, window_bounds = array<i64: 2, 2>}]} {
    %c0 = arith.constant 0 : index
    %c0_0 = arith.constant 0 : index
    %0 = vector.load %arg5[%c0, %c0_0] : memref<108x128xf32, #tpu.memory_space<vmem>>, vector<1x30xf32>
    %c1 = arith.constant 1 : index
    %c0_1 = arith.constant 0 : index
    %1 = vector.load %arg5[%c1, %c0_1] : memref<108x128xf32, #tpu.memory_space<vmem>>, vector<1x60xf32>
    %c2 = arith.constant 2 : index
    %c0_2 = arith.constant 0 : index
    %2 = vector.load %arg5[%c2, %c0_2] : memref<108x128xf32, #tpu.memory_space<vmem>>, vector<1x100xf32>
    %c3 = arith.constant 3 : index
    %c0_3 = arith.constant 0 : index
    %3 = vector.load %arg5[%c3, %c0_3] : memref<108x128xf32, #tpu.memory_space<vmem>>, vector<1x2xf32>
    %c8 = arith.constant 8 : index
    %c0_4 = arith.constant 0 : index
    %4 = vector.load %arg5[%c8, %c0_4] : memref<108x128xf32, #tpu.memory_space<vmem>>, vector<100x2xf32>
    %c0_5 = arith.constant 0 : index
    %c0_6 = arith.constant 0 : index
    %c0_7 = arith.constant 0 : index
    %5 = vector.load %arg1[%c0_5, %c0_6, %c0_7] : memref<1x288x18xbf16, #tpu.memory_space<vmem>>, vector<1x288x18xbf16>
    %6 = vector.shape_cast %5 : vector<1x288x18xbf16> to vector<288x18xbf16>
    %c0_8 = arith.constant 0 : index
    %c0_9 = arith.constant 0 : index
    %7 = vector.load %arg2[%c0_8, %c0_9] : memref<18x30xbf16, #tpu.memory_space<vmem>>, vector<18x30xbf16>
    %cst = arith.constant dense<0.000000e+00> : vector<288x30xf32>
    %8 = tpu.matmul %6, %7, %cst {dimension_numbers = #tpu.dot_dimension_numbers<[1], [0], [0], [1], [0, 0, 1, 1], [], []>} : vector<288x18xbf16>, vector<18x30xbf16>, vector<288x30xf32> -> vector<288x30xf32>
    %9 = vector.extract_strided_slice %8 {offsets = [0, 0], sizes = [72, 30], strides = [1, 1]} : vector<288x30xf32> to vector<72x30xf32>
    %10 = vector.extract_strided_slice %8 {offsets = [72, 0], sizes = [72, 30], strides = [1, 1]} : vector<288x30xf32> to vector<72x30xf32>
    %11 = arith.maximumf %9, %10 : vector<72x30xf32>
    %12 = vector.extract_strided_slice %8 {offsets = [144, 0], sizes = [72, 30], strides = [1, 1]} : vector<288x30xf32> to vector<72x30xf32>
    %13 = vector.extract_strided_slice %8 {offsets = [216, 0], sizes = [72, 30], strides = [1, 1]} : vector<288x30xf32> to vector<72x30xf32>
    %14 = arith.maximumf %12, %13 : vector<72x30xf32>
    %15 = arith.maximumf %11, %14 : vector<72x30xf32>
    %16 = vector.broadcast %0 : vector<1x30xf32> to vector<72x30xf32>
    %17 = arith.addf %15, %16 : vector<72x30xf32>
    %cst_10 = arith.constant 0.000000e+00 : f32
    %18 = vector.broadcast %cst_10 : f32 to vector<72x30xf32>
    %19 = arith.maximumf %17, %18 : vector<72x30xf32>
    %20 = vector.extract_strided_slice %19 {offsets = [0, 0], sizes = [8, 30], strides = [1, 1]} : vector<72x30xf32> to vector<8x30xf32>
    %21 = vector.extract_strided_slice %19 {offsets = [12, 0], sizes = [8, 30], strides = [1, 1]} : vector<72x30xf32> to vector<8x30xf32>
    %22 = vector.extract_strided_slice %19 {offsets = [24, 0], sizes = [8, 30], strides = [1, 1]} : vector<72x30xf32> to vector<8x30xf32>
    %23 = vector.extract_strided_slice %19 {offsets = [36, 0], sizes = [8, 30], strides = [1, 1]} : vector<72x30xf32> to vector<8x30xf32>
    %24 = tpu.concatenate %20, %21, %22, %23 in 0 : vector<8x30xf32>, vector<8x30xf32>, vector<8x30xf32>, vector<8x30xf32> -> vector<32x30xf32>
    %25 = vector.extract_strided_slice %19 {offsets = [2, 0], sizes = [8, 30], strides = [1, 1]} : vector<72x30xf32> to vector<8x30xf32>
    %26 = vector.extract_strided_slice %19 {offsets = [14, 0], sizes = [8, 30], strides = [1, 1]} : vector<72x30xf32> to vector<8x30xf32>
    %27 = vector.extract_strided_slice %19 {offsets = [26, 0], sizes = [8, 30], strides = [1, 1]} : vector<72x30xf32> to vector<8x30xf32>
    %28 = vector.extract_strided_slice %19 {offsets = [38, 0], sizes = [8, 30], strides = [1, 1]} : vector<72x30xf32> to vector<8x30xf32>
    %29 = tpu.concatenate %25, %26, %27, %28 in 0 : vector<8x30xf32>, vector<8x30xf32>, vector<8x30xf32>, vector<8x30xf32> -> vector<32x30xf32>
    %30 = vector.extract_strided_slice %19 {offsets = [4, 0], sizes = [8, 30], strides = [1, 1]} : vector<72x30xf32> to vector<8x30xf32>
    %31 = vector.extract_strided_slice %19 {offsets = [16, 0], sizes = [8, 30], strides = [1, 1]} : vector<72x30xf32> to vector<8x30xf32>
    %32 = vector.extract_strided_slice %19 {offsets = [28, 0], sizes = [8, 30], strides = [1, 1]} : vector<72x30xf32> to vector<8x30xf32>
    %33 = vector.extract_strided_slice %19 {offsets = [40, 0], sizes = [8, 30], strides = [1, 1]} : vector<72x30xf32> to vector<8x30xf32>
    %34 = tpu.concatenate %30, %31, %32, %33 in 0 : vector<8x30xf32>, vector<8x30xf32>, vector<8x30xf32>, vector<8x30xf32> -> vector<32x30xf32>
    %35 = vector.extract_strided_slice %19 {offsets = [12, 0], sizes = [8, 30], strides = [1, 1]} : vector<72x30xf32> to vector<8x30xf32>
    %36 = vector.extract_strided_slice %19 {offsets = [24, 0], sizes = [8, 30], strides = [1, 1]} : vector<72x30xf32> to vector<8x30xf32>
    %37 = vector.extract_strided_slice %19 {offsets = [36, 0], sizes = [8, 30], strides = [1, 1]} : vector<72x30xf32> to vector<8x30xf32>
    %38 = vector.extract_strided_slice %19 {offsets = [48, 0], sizes = [8, 30], strides = [1, 1]} : vector<72x30xf32> to vector<8x30xf32>
    %39 = tpu.concatenate %35, %36, %37, %38 in 0 : vector<8x30xf32>, vector<8x30xf32>, vector<8x30xf32>, vector<8x30xf32> -> vector<32x30xf32>
    %40 = vector.extract_strided_slice %19 {offsets = [14, 0], sizes = [8, 30], strides = [1, 1]} : vector<72x30xf32> to vector<8x30xf32>
    %41 = vector.extract_strided_slice %19 {offsets = [26, 0], sizes = [8, 30], strides = [1, 1]} : vector<72x30xf32> to vector<8x30xf32>
    %42 = vector.extract_strided_slice %19 {offsets = [38, 0], sizes = [8, 30], strides = [1, 1]} : vector<72x30xf32> to vector<8x30xf32>
    %43 = vector.extract_strided_slice %19 {offsets = [50, 0], sizes = [8, 30], strides = [1, 1]} : vector<72x30xf32> to vector<8x30xf32>
    %44 = tpu.concatenate %40, %41, %42, %43 in 0 : vector<8x30xf32>, vector<8x30xf32>, vector<8x30xf32>, vector<8x30xf32> -> vector<32x30xf32>
    %45 = vector.extract_strided_slice %19 {offsets = [16, 0], sizes = [8, 30], strides = [1, 1]} : vector<72x30xf32> to vector<8x30xf32>
    %46 = vector.extract_strided_slice %19 {offsets = [28, 0], sizes = [8, 30], strides = [1, 1]} : vector<72x30xf32> to vector<8x30xf32>
    %47 = vector.extract_strided_slice %19 {offsets = [40, 0], sizes = [8, 30], strides = [1, 1]} : vector<72x30xf32> to vector<8x30xf32>
    %48 = vector.extract_strided_slice %19 {offsets = [52, 0], sizes = [8, 30], strides = [1, 1]} : vector<72x30xf32> to vector<8x30xf32>
    %49 = tpu.concatenate %45, %46, %47, %48 in 0 : vector<8x30xf32>, vector<8x30xf32>, vector<8x30xf32>, vector<8x30xf32> -> vector<32x30xf32>
    %50 = vector.extract_strided_slice %19 {offsets = [24, 0], sizes = [8, 30], strides = [1, 1]} : vector<72x30xf32> to vector<8x30xf32>
    %51 = vector.extract_strided_slice %19 {offsets = [36, 0], sizes = [8, 30], strides = [1, 1]} : vector<72x30xf32> to vector<8x30xf32>
    %52 = vector.extract_strided_slice %19 {offsets = [48, 0], sizes = [8, 30], strides = [1, 1]} : vector<72x30xf32> to vector<8x30xf32>
    %53 = vector.extract_strided_slice %19 {offsets = [60, 0], sizes = [8, 30], strides = [1, 1]} : vector<72x30xf32> to vector<8x30xf32>
    %54 = tpu.concatenate %50, %51, %52, %53 in 0 : vector<8x30xf32>, vector<8x30xf32>, vector<8x30xf32>, vector<8x30xf32> -> vector<32x30xf32>
    %55 = vector.extract_strided_slice %19 {offsets = [26, 0], sizes = [8, 30], strides = [1, 1]} : vector<72x30xf32> to vector<8x30xf32>
    %56 = vector.extract_strided_slice %19 {offsets = [38, 0], sizes = [8, 30], strides = [1, 1]} : vector<72x30xf32> to vector<8x30xf32>
    %57 = vector.extract_strided_slice %19 {offsets = [50, 0], sizes = [8, 30], strides = [1, 1]} : vector<72x30xf32> to vector<8x30xf32>
    %58 = vector.extract_strided_slice %19 {offsets = [62, 0], sizes = [8, 30], strides = [1, 1]} : vector<72x30xf32> to vector<8x30xf32>
    %59 = tpu.concatenate %55, %56, %57, %58 in 0 : vector<8x30xf32>, vector<8x30xf32>, vector<8x30xf32>, vector<8x30xf32> -> vector<32x30xf32>
    %60 = vector.extract_strided_slice %19 {offsets = [28, 0], sizes = [8, 30], strides = [1, 1]} : vector<72x30xf32> to vector<8x30xf32>
    %61 = vector.extract_strided_slice %19 {offsets = [40, 0], sizes = [8, 30], strides = [1, 1]} : vector<72x30xf32> to vector<8x30xf32>
    %62 = vector.extract_strided_slice %19 {offsets = [52, 0], sizes = [8, 30], strides = [1, 1]} : vector<72x30xf32> to vector<8x30xf32>
    %63 = vector.extract_strided_slice %19 {offsets = [64, 0], sizes = [8, 30], strides = [1, 1]} : vector<72x30xf32> to vector<8x30xf32>
    %64 = tpu.concatenate %60, %61, %62, %63 in 0 : vector<8x30xf32>, vector<8x30xf32>, vector<8x30xf32>, vector<8x30xf32> -> vector<32x30xf32>
    %65 = tpu.concatenate %24, %29, %34, %39, %44, %49, %54, %59, %64 in 1 : vector<32x30xf32>, vector<32x30xf32>, vector<32x30xf32>, vector<32x30xf32>, vector<32x30xf32>, vector<32x30xf32>, vector<32x30xf32>, vector<32x30xf32>, vector<32x30xf32> -> vector<32x270xf32>
    %66 = arith.truncf %65 : vector<32x270xf32> to vector<32x270xbf16>
    %c0_11 = arith.constant 0 : index
    %c0_12 = arith.constant 0 : index
    %67 = vector.load %arg3[%c0_11, %c0_12] : memref<270x60xbf16, #tpu.memory_space<vmem>>, vector<270x60xbf16>
    %cst_13 = arith.constant dense<0.000000e+00> : vector<32x60xf32>
    %68 = tpu.matmul %66, %67, %cst_13 {dimension_numbers = #tpu.dot_dimension_numbers<[1], [0], [0], [1], [0, 0, 1, 1], [], []>} : vector<32x270xbf16>, vector<270x60xbf16>, vector<32x60xf32> -> vector<32x60xf32>
    %69 = vector.extract_strided_slice %68 {offsets = [0, 0], sizes = [8, 60], strides = [1, 1]} : vector<32x60xf32> to vector<8x60xf32>
    %70 = vector.extract_strided_slice %68 {offsets = [8, 0], sizes = [8, 60], strides = [1, 1]} : vector<32x60xf32> to vector<8x60xf32>
    %71 = arith.maximumf %69, %70 : vector<8x60xf32>
    %72 = vector.extract_strided_slice %68 {offsets = [16, 0], sizes = [8, 60], strides = [1, 1]} : vector<32x60xf32> to vector<8x60xf32>
    %73 = vector.extract_strided_slice %68 {offsets = [24, 0], sizes = [8, 60], strides = [1, 1]} : vector<32x60xf32> to vector<8x60xf32>
    %74 = arith.maximumf %72, %73 : vector<8x60xf32>
    %75 = vector.extract_strided_slice %71 {offsets = [0, 0], sizes = [2, 60], strides = [1, 1]} : vector<8x60xf32> to vector<2x60xf32>
    %76 = vector.extract_strided_slice %71 {offsets = [2, 0], sizes = [2, 60], strides = [1, 1]} : vector<8x60xf32> to vector<2x60xf32>
    %77 = arith.maximumf %75, %76 : vector<2x60xf32>
    %78 = vector.extract_strided_slice %71 {offsets = [4, 0], sizes = [2, 60], strides = [1, 1]} : vector<8x60xf32> to vector<2x60xf32>
    %79 = vector.extract_strided_slice %71 {offsets = [6, 0], sizes = [2, 60], strides = [1, 1]} : vector<8x60xf32> to vector<2x60xf32>
    %80 = arith.maximumf %78, %79 : vector<2x60xf32>
    %81 = vector.extract_strided_slice %74 {offsets = [0, 0], sizes = [2, 60], strides = [1, 1]} : vector<8x60xf32> to vector<2x60xf32>
    %82 = vector.extract_strided_slice %74 {offsets = [2, 0], sizes = [2, 60], strides = [1, 1]} : vector<8x60xf32> to vector<2x60xf32>
    %83 = arith.maximumf %81, %82 : vector<2x60xf32>
    %84 = vector.extract_strided_slice %74 {offsets = [4, 0], sizes = [2, 60], strides = [1, 1]} : vector<8x60xf32> to vector<2x60xf32>
    %85 = vector.extract_strided_slice %74 {offsets = [6, 0], sizes = [2, 60], strides = [1, 1]} : vector<8x60xf32> to vector<2x60xf32>
    %86 = arith.maximumf %84, %85 : vector<2x60xf32>
    %87 = vector.broadcast %1 : vector<1x60xf32> to vector<2x60xf32>
    %88 = arith.addf %77, %87 : vector<2x60xf32>
    %cst_14 = arith.constant 0.000000e+00 : f32
    %89 = vector.broadcast %cst_14 : f32 to vector<2x60xf32>
    %90 = arith.maximumf %88, %89 : vector<2x60xf32>
    %91 = vector.broadcast %1 : vector<1x60xf32> to vector<2x60xf32>
    %92 = arith.addf %80, %91 : vector<2x60xf32>
    %cst_15 = arith.constant 0.000000e+00 : f32
    %93 = vector.broadcast %cst_15 : f32 to vector<2x60xf32>
    %94 = arith.maximumf %92, %93 : vector<2x60xf32>
    %95 = vector.broadcast %1 : vector<1x60xf32> to vector<2x60xf32>
    %96 = arith.addf %83, %95 : vector<2x60xf32>
    %cst_16 = arith.constant 0.000000e+00 : f32
    %97 = vector.broadcast %cst_16 : f32 to vector<2x60xf32>
    %98 = arith.maximumf %96, %97 : vector<2x60xf32>
    %99 = vector.broadcast %1 : vector<1x60xf32> to vector<2x60xf32>
    %100 = arith.addf %86, %99 : vector<2x60xf32>
    %cst_17 = arith.constant 0.000000e+00 : f32
    %101 = vector.broadcast %cst_17 : f32 to vector<2x60xf32>
    %102 = arith.maximumf %100, %101 : vector<2x60xf32>
    %103 = tpu.concatenate %90, %94, %98, %102 in 1 : vector<2x60xf32>, vector<2x60xf32>, vector<2x60xf32>, vector<2x60xf32> -> vector<2x240xf32>
    %104 = arith.truncf %103 : vector<2x240xf32> to vector<2x240xbf16>
    %c0_18 = arith.constant 0 : index
    %c0_19 = arith.constant 0 : index
    %105 = vector.load %arg4[%c0_18, %c0_19] : memref<240x100xbf16, #tpu.memory_space<vmem>>, vector<240x100xbf16>
    %cst_20 = arith.constant dense<0.000000e+00> : vector<2x100xf32>
    %106 = tpu.matmul %104, %105, %cst_20 {dimension_numbers = #tpu.dot_dimension_numbers<[1], [0], [0], [1], [0, 0, 1, 1], [], []>} : vector<2x240xbf16>, vector<240x100xbf16>, vector<2x100xf32> -> vector<2x100xf32>
    %107 = vector.broadcast %2 : vector<1x100xf32> to vector<2x100xf32>
    %108 = arith.addf %106, %107 : vector<2x100xf32>
    %cst_21 = arith.constant 0.000000e+00 : f32
    %109 = vector.broadcast %cst_21 : f32 to vector<2x100xf32>
    %110 = arith.maximumf %108, %109 : vector<2x100xf32>
    %cst_22 = arith.constant dense<0.000000e+00> : vector<2x2xf32>
    %111 = tpu.matmul %110, %4, %cst_22 {dimension_numbers = #tpu.dot_dimension_numbers<[1], [0], [0], [1], [0, 0, 1, 1], [], []>} : vector<2x100xf32>, vector<100x2xf32>, vector<2x2xf32> -> vector<2x2xf32>
    %112 = vector.broadcast %3 : vector<1x2xf32> to vector<2x2xf32>
    %113 = arith.addf %111, %112 : vector<2x2xf32>
    %c0_23 = arith.constant 0 : index
    %c0_24 = arith.constant 0 : index
    %114 = vector.load %arg6[%c0_23, %c0_24] : memref<2x2xf32, #tpu.memory_space<vmem>>, vector<2x2xf32>
    tpu.vector_store %arg6[%c0_23, %c0_24], %113 {strides = array<i32>} : memref<2x2xf32, #tpu.memory_space<vmem>>, vector<2x2xf32>,
    return
  }
  func.func @transform_0(%arg0: i32) -> (i32, i32, i32) {
    %c0_i32 = arith.constant 0 : i32
    %c0_i32_0 = arith.constant 0 : i32
    %c0_i32_1 = arith.constant 0 : i32
    return %arg0, %c0_i32, %c0_i32_0 : i32, i32, i32
  }
  func.func @transform_1(%arg0: i32) -> (i32, i32) {
    %c0_i32 = arith.constant 0 : i32
    %c0_i32_0 = arith.constant 0 : i32
    %c0_i32_1 = arith.constant 0 : i32
    return %c0_i32, %c0_i32_0 : i32, i32
  }
  func.func @transform_2(%arg0: i32) -> (i32, i32) {
    %c0_i32 = arith.constant 0 : i32
    %c0_i32_0 = arith.constant 0 : i32
    %c0_i32_1 = arith.constant 0 : i32
    return %c0_i32, %c0_i32_0 : i32, i32
  }
  func.func @transform_3(%arg0: i32) -> (i32, i32) {
    %c0_i32 = arith.constant 0 : i32
    %c0_i32_0 = arith.constant 0 : i32
    %c0_i32_1 = arith.constant 0 : i32
    return %c0_i32, %c0_i32_0 : i32, i32
  }
  func.func @transform_4(%arg0: i32) -> (i32, i32) {
    %c0_i32 = arith.constant 0 : i32
    %c0_i32_0 = arith.constant 0 : i32
    %c0_i32_1 = arith.constant 0 : i32
    return %c0_i32, %c0_i32_0 : i32, i32
  }
  func.func @transform_5(%arg0: i32) -> (i32, i32) {
    %c0_i32 = arith.constant 0 : i32
    %c0_i32_0 = arith.constant 0 : i32
    return %arg0, %c0_i32 : i32, i32
  }
}

</mosaic_0001>

<bundles_post_ra>
// kernel: convnet_forward.1
= control target key start
LH: loop header
LB: loop body
LE: loop exit
PB: predicated region body
PF: predicated region fallthrough
CT: control target
= control target key end

     0   :  { %vm232_vm0 = vcmask 1040384   ;;  %vm177_vm1 = vcmask 146432   ;;  %s2093_s0 = inlined_call_operand.vmem [shape: bf16[1,288,18], index: 0, kind: input, shape index: {}]   ;;  %s2094_s1 = inlined_call_operand.vmem [shape: bf16[18,30], index: 1, kind: input, shape index: {}]   ;;  %s2095_s2 = inlined_call_operand.vmem [shape: bf16[270,60], index: 2, kind: input, shape index: {}]   ;;  %s2096_s3 = inlined_call_operand.vmem [shape: bf16[240,100], index: 3, kind: input, shape index: {}]   ;;  %s2097_s4 = inlined_call_operand.vmem [shape: f32[108,128], index: 4, kind: input, shape index: {}]   ;;  %s2098_s5 = inlined_call_operand.hbm [shape: f32[2,2], index: 5, kind: output, shape index: {}]  }
   0x1   :  { %v1533_v0 = vld [vmem:[%s2094_s1] sm:$0xff]   ;;  %v1534_v1 = vld [vmem:[%s2094_s1 + $0x8] ss:$0 sps:$4 sm:$0x11]   ;;  %v1537_v5 = vld [vmem:[%s2093_s0 + $0x10] sm:$0xff]  }
   0x2   :  { %v1535_v2 = vld [vmem:[%s2093_s0] sm:$0xff]   ;;  %1340 = vmatprep.subr.bf16.mxu0 %v1533_v0  ;;  %1433 = vmatprep.subr.bf16.mxu1 %v1533_v0  ;;  %v234_v3 = vsel %vm232_vm0, %v1534_v1, 0  ;;  %v1536_v4 = vld [vmem:[%s2093_s0 + $0x8] sm:$0xff]   ;;  %v1538_v6 = vld [vmem:[%s2093_s0 + $0x18] sm:$0xff]  }
   0x3   :  { %1341 = vmatpush3.bf16.msra.mxu0 %v1533_v0  ;;  %1344 = vmatprep.mubr.msk.bf16.mxu0 %vm177_vm1, %v1535_v2  ;;  %v1539_v7 = vld [vmem:[%s2093_s0 + $0x20] sm:$0xff]   ;;  %v1548_v9 = vld [vmem:[%s2093_s0 + $0x88] sm:$0xff]   ;;  %v1541_v11 = vld [vmem:[%s2093_s0 + $0x30] sm:$0xff]  }
   0x4   :  { %1437 = vmatprep.subr.msk.bf16.mxu0 %vm232_vm0, %v1534_v1  ;;  %1435 = vmatpush3.bf16.msra.mxu1 %v1533_v0  ;;  %v1547_v8 = vld [vmem:[%s2093_s0 + $0x80] sm:$0xff]   ;;  %v1540_v10 = vld [vmem:[%s2093_s0 + $0x28] sm:$0xff]   ;;  %v1542_v12 = vld [vmem:[%s2093_s0 + $0x38] sm:$0xff]  }
   0x5   :  { %1438 = vmatprep.subr.msk.bf16.mxu1 %vm232_vm0, %v1534_v1  ;;  %1376 = vmatprep.mubr.msk.bf16.mxu1 %vm177_vm1, %v1547_v8  ;;  %v1543_v13 = vld [vmem:[%s2093_s0 + $0x40] sm:$0xff]   ;;  %v1544_v14 = vld [vmem:[%s2093_s0 + $0x48] sm:$0xff]   ;;  %v1545_v15 = vld [vmem:[%s2093_s0 + $0x50] sm:$0xff]  }
   0x7   :  { %1343 = vmatpush3.bf16.msra.mxu0 %v234_v3 }
   0x8   :  { %1436 = vmatpush3.bf16.msra.mxu1 %v234_v3 }
   0xa   :  { %1345 = vmatmul.mubr.msk.bf16.vlgmr.msra.gmra.mrb[0].mxu0 %vm177_vm1, %v1536_v4 }
   0xb   :  { %1348 = vmatprep.mubr.msk.bf16.mxu0 %vm177_vm1, %v1537_v5  ;;  %1377 = vmatmul.mubr.msk.bf16.vlgmr.msra.gmra.mrb[0].mxu1 %vm177_vm1, %v1548_v9 }
  0x12   :  { %1349 = vmatmul.mubr.msk.bf16.gmra.mrb[4].mxu0 %vm177_vm1, %v1538_v6 }
  0x13   :  { %1352 = vmatprep.mubr.msk.bf16.mxu0 %vm177_vm1, %v1539_v7 }
  0x1a   :  { %1353 = vmatmul.mubr.msk.bf16.gmra.mrb[8].mxu0 %vm177_vm1, %v1540_v10 }
  0x1b   :  { %1356 = vmatprep.mubr.msk.bf16.mxu0 %vm177_vm1, %v1541_v11 }
  0x22   :  { %1357 = vmatmul.mubr.msk.bf16.gmra.mrb[12].mxu0 %vm177_vm1, %v1542_v12 }
  0x23   :  { %1360 = vmatprep.mubr.msk.bf16.mxu0 %vm177_vm1, %v1543_v13 }
  0x24   :  { %10 = vsyncpa [#allocation3], 0  ;;  %v1546_v16 = vld [vmem:[%s2093_s0 + $0x58] sm:$0xff]   ;;  %v1549_v17 = vld [vmem:[%s2093_s0 + $0x60] sm:$0xff]   ;;  %vm464_vm2 = vcmask 1043456   ;;  %vm476_vm3 = vcmask 1045504  }
  0x25   :  { %v1550_v18 = vld [vmem:[%s2093_s0 + $0x68] sm:$0xff]   ;;  %v1551_v19 = vld [vmem:[%s2093_s0 + $0x70] sm:$0xff]   ;;  %v1552_v20 = vld [vmem:[%s2093_s0 + $0x78] sm:$0xff]   ;;  %vm480_vm4 = vcmask 1041408   ;;  %s1609_s23 = smov 22   ;;  %s1610_s27 = smov 60  }
  0x26   :  { %v1553_v21 = vld [vmem:[%s2095_s2 + $0x40] sm:$0xff]   ;;  %v1555_v11 = vld [vmem:[%s2095_s2 + $0x48] sm:$0xff]   ;;  %s1611_s28 = smov 52   ;;  %s1612_s0 = smov 82   ;;  %vm793_vm5 = vcmask 1046528   ;;  %vm625_vm6 = vcmask 179200  }
  0x27   :  { %1295 = vmatprep.subr.bf16.mxu1 %v1553_v21  ;;  %v1759_v60 = vld [vmem:[%s2097_s4] ss:$0 sm:$0xff]  ;;  %s1613_s12 = smov 120   ;;  %s1614_s13 = smov 112   ;;  %vm605_vm7 = vcmask 244736   ;;  %vm630_vm8 = vcmask 424960  }
  0x28   :  { %v1554_v10 = vld [vmem:[%s2095_s2] sm:$0xff]   ;;  %s1615_s18 = smov 30   ;;  %s1616_s21 = smov 90   ;;  %vm610_vm9 = vcmask 490496   ;;  %vm615_vm10 = vcmask 736256   ;;  %vm635_vm11 = vcmask 670720  }
  0x29   :  { %1296 = vmatpush3.bf16.msra.mxu1 %v1554_v10  ;;  %vm640_vm12 = vcmask 916480   ;;  %vm620_vm13 = vcmask 982016   ;;  %vm786_vm14 = vcmask 113664   ;;  %vm1619_vm15 = vmmov 0   ;;  %s1621_s30 = smov [#allocation2]  }
  0x2a   :  { %1361 = vmatmul.mubr.msk.bf16.gmra.mrb[16].mxu0 %vm177_vm1, %v1544_v14  ;;  %1297 = vmatprep.subr.bf16.mxu1 %v1555_v11  ;;  %vm1103_vm0 = vcmask 818176   ;;  %s1188_s6 = sshll.u32 %s1621_s30, 4  ;;  %s1189_s6 = int_to_ptr.vmem [resolvable:$true] %s1188_s6 }
  0x2b   :  { %1364 = vmatprep.mubr.msk.bf16.mxu0 %vm177_vm1, %v1545_v15  ;;  %s1585_s7 = scalar_lea.vmem %s1189_s6, 32  ;;  %p1590_p1 = scmp.lt.s32.totalorder %s1189_s6, %s1189_s6 }
  0x2c   :  { %p1586_p0 = scmp.ne.s32.totalorder %s1189_s6, %s1585_s7  ;;  %p1591_p2 = scmp.lt.s32.totalorder %s1585_s7, %s1585_s7 }
  0x2e   :  { %p1592_p3 = por %p1591_p2, %p1590_p1 }
  0x30   :  { %p1593_p4 = pnand %p1592_p3, %p1586_p0 }
  0x32   :  { %1365 = vmatmul.mubr.msk.bf16.gmra.mrb[20].mxu0 %vm177_vm1, %v1546_v16  ;;  %v1556_v16 = vld [vmem:[%s2095_s2 + $0x8] sm:$0xff]  }
  0x33   :  { %1368 = vmatprep.mubr.msk.bf16.mxu0 %vm177_vm1, %v1549_v17  ;;  %1298 = vmatpush3.bf16.msra.mxu1 %v1556_v16 }
  0x3a   :  { %1369 = vmatmul.mubr.msk.bf16.gmra.mrb[24].mxu0 %vm177_vm1, %v1550_v18 }
  0x3b   :  { %1372 = vmatprep.mubr.msk.bf16.mxu0 %vm177_vm1, %v1551_v19 }
  0x42   :  { %1373 = vmatmul.mubr.msk.bf16.gmra.mrb[28].mxu0 %vm177_vm1, %v1552_v20  ;;  %vm1180_vm1 = vcmask 9216  }
  0xdd   :  { %v1733_v22 = vpop.f32.mrb[0].mxu0 }
  0xde   :  { %v270_v23 = vpop.f32.mrb[1].mxu0  ;;  %v1378_v26 = vpop.f32.mrb[0].mxu1 }
  0xdf   :  { %v1735_v24 = vpop.f32.mrb[2].mxu0  ;;  %v398_v28 = vpop.f32.mrb[1].mxu1 }
  0xe0   :  { %v1737_v25 = vpop.f32.mrb[3].mxu0  ;;  %v1379_v30 = vpop.f32.mrb[2].mxu1 }
  0xe1   :  { %v401_v32 = vpop.f32.mrb[3].mxu1 }
  0xe5   :  { %v1350_v27 = vpop.f32.mrb[4].mxu0 }
  0xe6   :  { %v1739_v29 = vpop.f32.mrb[5].mxu0 }
  0xe7   :  { %v1351_v31 = vpop.f32.mrb[6].mxu0 }
  0xe8   :  { %v289_v33 = vpop.f32.mrb[7].mxu0 }
  0xed   :  { %v1741_v34 = vpop.f32.mrb[8].mxu0 }
  0xee   :  { %v414_v35 = vmax.f32 %v1737_v25, %v1741_v34  ;;  %v302_v36 = vpop.f32.mrb[9].mxu0 }
  0xef   :  { %v1745_v37 = vpop.f32.mrb[10].mxu0 }
  0xf0   :  { %v415_v38 = vmax.f32 %v1733_v22, %v1745_v37  ;;  %v305_v39 = vpop.f32.mrb[11].mxu0  ;;  %v1559_v22 = vld [vmem:[%s2095_s2 + $0x58] sm:$0xff]  }
  0xf1   :  { %v413_v40 = vmax.f32 %v270_v23, %v305_v39  ;;  %v1560_v37 = vld [vmem:[%s2095_s2 + $0x18] sm:$0xff]  }
  0xf5   :  { %v1358_v41 = vpop.f32.mrb[12].mxu0 }
  0xf6   :  { %v418_v42 = vmax.f32 %v289_v33, %v1358_v41  ;;  %v318_v43 = vpop.f32.mrb[13].mxu0 }
  0xf7   :  { %v416_v44 = vmax.f32 %v1735_v24, %v318_v43  ;;  %v1359_v45 = vpop.f32.mrb[14].mxu0 }
  0xf8   :  { %v419_v46 = vmax.f32 %v1350_v27, %v1359_v45  ;;  %v1750_v47 = vpop.f32.mrb[15].mxu0 }
  0xf9   :  { %v417_v48 = vmax.f32 %v1739_v29, %v1750_v47 }
  0xfd   :  { %v1362_v49 = vpop.f32.mrb[16].mxu0 }
  0xfe   :  { %v334_v50 = vpop.f32.mrb[17].mxu0 }
  0xff   :  { %v420_v51 = vmax.f32 %v1351_v31, %v334_v50  ;;  %v1363_v52 = vpop.f32.mrb[18].mxu0 }
 0x100   :  { %v337_v53 = vpop.f32.mrb[19].mxu0 }
 0x101   :  { %v421_v54 = vmax.f32 %v302_v36, %v337_v53 }
 0x105   :  { %v1366_v55 = vpop.f32.mrb[20].mxu0 }
 0x106   :  { %v1754_v56 = vpop.f32.mrb[21].mxu0 }
 0x107   :  { %v1367_v57 = vpop.f32.mrb[22].mxu0 }
 0x108   :  { %v427_v58 = vmax.f32 %v1367_v57, %v398_v28  ;;  %v353_v59 = vpop.f32.mrb[23].mxu0 }
 0x10a   :  { %v436_v61 = vmax.f32 %v418_v42, %v427_v58 }
 0x10c   :  { %v449_v62 = vadd.f32 %v1759_v60, %v436_v61 }
 0x10d   :  { %v1370_v63 = vpop.f32.mrb[24].mxu0 }
 0x10e   :  { %v430_v0 = vmax.f32 %v1370_v63, %v1379_v30  ;;  %v366_v1 = vpop.f32.mrb[25].mxu0  ;;  %v1762_v7 = vmax.f32 %v449_v62, 0.0 }
 0x10f   :  { %v428_v2 = vmax.f32 %v366_v1, %v401_v32  ;;  %v1371_v3 = vpop.f32.mrb[26].mxu0 }
 0x110   :  { %v439_v4 = vmax.f32 %v421_v54, %v430_v0  ;;  %v422_v5 = vmax.f32 %v1362_v49, %v1371_v3  ;;  %v369_v6 = vpop.f32.mrb[27].mxu0  ;;  %v472_v23 = vrot.slane %v1762_v7, 4  ;;  %v489_v28 = vrot.slane %v1762_v7, 6  ;;  %v1558_v49 = vld [vmem:[%s2095_s2 + $0x10] sm:$0xff]  }
 0x111   :  { %v437_v8 = vmax.f32 %v419_v46, %v428_v2  ;;  %v429_v9 = vmax.f32 %v369_v6, %v1378_v26  ;;  %v1557_v46 = vld [vmem:[%s2095_s2 + $0x50] sm:$0xff]  }
 0x112   :  { %v452_v12 = vadd.f32 %v1759_v60, %v439_v4  ;;  %v431_v13 = vmax.f32 %v413_v40, %v422_v5  ;;  %1299 = vmatprep.subr.bf16.mxu1 %v1557_v46  ;;  %v1568_v46 = vld [vmem:[%s2095_s2 + $0x38] sm:$0xff]  }
 0x113   :  { %v450_v14 = vadd.f32 %v1759_v60, %v437_v8  ;;  %v438_v15 = vmax.f32 %v420_v51, %v429_v9  ;;  %1300 = vmatpush3.bf16.msra.mxu1 %v1558_v49  ;;  %v1569_v49 = vld [vmem:[%s2095_s2 + $0x80] sm:$0x7f]  }
 0x114   :  { %v1775_v17 = vmax.f32 %v452_v12, 0.0  ;;  %v444_v18 = vadd.f32 %v1759_v60, %v431_v13  ;;  %1301 = vmatprep.subr.bf16.mxu1 %v1559_v22 }
 0x115   :  { %v1778_v19 = vmax.f32 %v450_v14, 0.0  ;;  %v451_v20 = vadd.f32 %v1759_v60, %v438_v15  ;;  %v1374_v21 = vpop.f32.mrb[28].mxu0 }
 0x116   :  { %v1782_v24 = vmax.f32 %v444_v18, 0.0  ;;  %v425_v26 = vmax.f32 %v353_v59, %v1374_v21  ;;  %v382_v27 = vpop.f32.mrb[29].mxu0  ;;  %v504_v30 = vrot.slane %v1775_v17, 4  ;;  %v507_v39 = vrot.slane %v1775_v17, 6  ;;  %v1561_v21 = vld [vmem:[%s2095_s2 + $0x60] sm:$0xff]  }
 0x117   :  { %v460_v31 = vmax.f32 %v451_v20, 0.0  ;;  %v423_v32 = vmax.f32 %v1363_v52, %v382_v27  ;;  %v1375_v33 = vpop.f32.mrb[30].mxu0  ;;  %v500_v36 = vrot.slane %v1778_v19, 4  ;;  %v497_v45 = vrot.slane %v1778_v19, 2  ;;  %1302 = vmatpush3.bf16.msra.mxu1 %v1560_v37 }
 0x118   :  { %v434_v40 = vmax.f32 %v416_v44, %v425_v26  ;;  %v426_v41 = vmax.f32 %v1366_v55, %v1375_v33  ;;  %v385_v42 = vpop.f32.mrb[31].mxu0  ;;  %v491_v43 = vrot.slane %v1782_v24, 4  ;;  %v477_v55 = vrot.slane %v1782_v24, 2  ;;  %1303 = vmatprep.subr.bf16.mxu1 %v1561_v21 }
 0x119   :  { %v432_v50 = vmax.f32 %v414_v35, %v423_v32  ;;  %v424_v44 = vmax.f32 %v1754_v56, %v385_v42  ;;  %v501_v51 = vrot.slane %v460_v31, 4  ;;  %v498_v52 = vrot.slane %v460_v31, 2  ;;  %v1565_v42 = vld [vmem:[%s2095_s2 + $0x70] sm:$0xff]  }
 0x11a   :  { %v447_v53 = vadd.f32 %v1759_v60, %v434_v40  ;;  %v435_v54 = vmax.f32 %v417_v48, %v426_v41  ;;  %v506_v57 = vrot.slane %v460_v31, 6  ;;  %v1564_v41 = vld [vmem:[%s2095_s2 + $0x28] sm:$0xff]  }
 0x11b   :  { %v445_v58 = vadd.f32 %v1759_v60, %v432_v50  ;;  %v433_v25 = vmax.f32 %v415_v38, %v424_v44  ;;  %v1810_v34 = vsel %vm464_vm2, %v500_v36, %v501_v51  ;;  %v1813_v35 = vsel %vm476_vm3, %v497_v45, %v498_v52  ;;  %v1567_v45 = vld [vmem:[%s2095_s2 + $0x78] sm:$0xff]  }
 0x11c   :  { %v1815_v56 = vmax.f32 %v447_v53, 0.0  ;;  %v448_v29 = vadd.f32 %v1759_v60, %v435_v54  ;;  %v1528_v47 = vpack.i.bf16 %v1775_v17, %v1810_v34  ;;  %v1453_v48 = vpack.i.bf16 %v1810_v34, %v1762_v7 }
 0x11d   :  { %v454_v38 = vmax.f32 %v445_v58, 0.0  ;;  %v446_v59 = vadd.f32 %v1759_v60, %v433_v25  ;;  %v1830_v61 = vsel %vm464_vm2, %v501_v51, %v504_v30  ;;  %v1833_v62 = vsel %vm480_vm4, %v506_v57, %v507_v39 }
 0x11e   :  { %v457_v63 = vmax.f32 %v448_v29, 0.0  ;;  %1454 = vrot.lane.b32.xlu1 %v1453_v48, %s1609_s23  ;;  %v493_v0 = vrot.slane %v1815_v56, 4  ;;  %v485_v1 = vrot.slane %v1815_v56, 2  ;;  %v1503_v2 = vpack.i.bf16 %v1830_v61, %v1778_v19 }
 0x11f   :  { %v455_v3 = vmax.f32 %v446_v59, 0.0  ;;  %v465_v60 = vrot.slane %v454_v38, 4  ;;  %v478_v4 = vrot.slane %v454_v38, 2  ;;  %v481_v5 = vrot.slane %v454_v38, 6 }
 0x120   :  { %v471_v6 = vrot.slane %v457_v63, 4  ;;  %v486_v8 = vrot.slane %v457_v63, 2  ;;  %v488_v9 = vrot.slane %v457_v63, 6  ;;  %v1518_v10 = vpack.i.bf16 %v1833_v62, %v1813_v35 }
 0x121   :  { %v492_v11 = vsel %vm464_vm2, %v491_v43, %v465_v60  ;;  %v479_v12 = vsel %vm476_vm3, %v477_v55, %v478_v4  ;;  %v482_v13 = vrot.slane %v455_v3, 6  ;;  %v466_v14 = vrot.slane %v455_v3, 4  ;;  %v1566_v43 = vld [vmem:[%s2095_s2 + $0x30] sm:$0xff]  }
 0x122   :  { %v1458_v15 = vpack.i.bf16 %v455_v3, %v492_v11  ;;  %v1847_v16 = vsel %vm464_vm2, %v471_v6, %v472_v23  ;;  %v494_v18 = vsel %vm464_vm2, %v493_v0, %v471_v6  ;;  %v487_v20 = vsel %vm476_vm3, %v485_v1, %v486_v8  ;;  %v1562_v23 = vld [vmem:[%s2095_s2 + $0x20] sm:$0xff]  }
 0x123   :  { %v1468_v26 = vpack.i.bf16 %v1847_v16, %v1815_v56  ;;  %v1463_v27 = vpack.i.bf16 %v494_v18, %v455_v3  ;;  %v490_v30 = vsel %vm480_vm4, %v488_v9, %v489_v28  ;;  %v1478_v31 = vpack.i.bf16 %v1762_v7, %v494_v18  ;;  %v1563_v7 = vld [vmem:[%s2095_s2 + $0x68] sm:$0xff]   ;;  %1304 = vmatpush3.bf16.msra.mxu1 %v1562_v23 }
 0x124   :  { %1459 = vrot.lane.b32.xlu0 %v1458_v15, %s1610_s27  ;;  %v1473_v32 = vpack.i.bf16 %v490_v30, %v487_v20  ;;  %v1483_v33 = vpack.i.bf16 %v1813_v35, %v490_v30  ;;  %v483_v36 = vsel %vm480_vm4, %v481_v5, %v482_v13  ;;  %v1868_v28 = vsel %vm464_vm2, %v465_v60, %v466_v14 }
 0x125   :  { %1469 = vrot.lane.b32.xlu1 %v1468_v26, %s1611_s28  ;;  %v1498_v39 = vpack.i.bf16 %v483_v36, %v479_v12  ;;  %v1493_v40 = vpack.i.bf16 %v487_v20, %v483_v36  ;;  %1305 = vmatprep.subr.bf16.mxu1 %v1563_v7  ;;  %v1894_v50 = vsel %vm793_vm5, %v1569_v49, 0  ;;  %v1508_v44 = vpack.i.bf16 %v1815_v56, %v1868_v28 }
 0x126   :  { %v1523_v51 = vpack.i.bf16 %v1778_v19, %v1847_v16 }
 0x127   :  { %1306 = vmatpush3.bf16.msra.mxu1 %v1564_v41 }
 0x128   :  { %1464 = vrot.lane.b32.xlu0 %v1463_v27, %s1609_s23  ;;  %1307 = vmatprep.subr.bf16.mxu1 %v1565_v42 }
 0x129   :  { %1474 = vrot.lane.b32.xlu1 %v1473_v32, %s1612_s0 }
 0x12b   :  { %1308 = vmatpush3.bf16.msra.mxu1 %v1566_v43 }
 0x12c   :  { %1484 = vrot.lane.b32.xlu0 %v1483_v33, %s1613_s12  ;;  %1309 = vmatprep.subr.bf16.mxu1 %v1567_v45 }
 0x12d   :  { %1479 = vrot.lane.b32.xlu1 %v1478_v31, %s1614_s13 }
 0x12f   :  { %1310 = vmatpush3.bf16.msra.mxu1 %v1568_v46 }
 0x130   :  { %1489 = vrot.lane.b32.xlu0 %v1473_v32, %s1615_s18  ;;  %1439 = vmatprep.subr.msk.bf16.mxu1 %vm793_vm5, %v1569_v49 }
 0x131   :  { %1499 = vrot.lane.b32.xlu1 %v1498_v39, %s1615_s18 }
 0x134   :  { %1494 = vrot.lane.b32.xlu0 %v1493_v40, %s1613_s12 }
 0x135   :  { %1504 = vrot.lane.b32.xlu1 %v1503_v2, %s1611_s28 }
 0x138   :  { %1509 = vrot.lane.b32.xlu0 %v1508_v44, %s1616_s21 }
 0x139   :  { %1519 = vrot.lane.b32.xlu1 %v1518_v10, %s1612_s0 }
 0x13c   :  { %1514 = vrot.lane.b32.xlu0 %v1478_v31, %s1610_s27 }
 0x13d   :  { %1529 = vrot.lane.b32.xlu1 %v1528_v47, %s1614_s13 }
 0x140   :  { %1524 = vrot.lane.b32.xlu0 %v1523_v51, %s1616_s21 }
 0x190   :  { %v1908_v52 = vpop.permute.xlu1 %1454 }
 0x191   :  { %v1457_v19 = vunpack.i.h.bf16 %v1908_v52  ;;  %v1456_v34 = vunpack.i.l.bf16 %v1908_v52 }
 0x196   :  { %v1460_v53 = vpop.permute.xlu0 %1459 }
 0x197   :  { %v1470_v54 = vpop.permute.xlu1 %1469  ;;  %v1462_v48 = vunpack.i.h.bf16 %v1460_v53  ;;  %v1461_v22 = vunpack.i.l.bf16 %v1460_v53 }
 0x198   :  { %v1472_v37 = vunpack.i.h.bf16 %v1470_v54  ;;  %v1471_v59 = vunpack.i.l.bf16 %v1470_v54 }
 0x19a   :  { %v1465_v55 = vpop.permute.xlu0 %1464 }
 0x19b   :  { %v1475_v57 = vpop.permute.xlu1 %1474  ;;  %v1467_v61 = vunpack.i.h.bf16 %v1465_v55  ;;  %v1466_v62 = vunpack.i.l.bf16 %v1465_v55 }
 0x19c   :  { %v1477_v1 = vunpack.i.h.bf16 %v1475_v57  ;;  %v1476_v2 = vunpack.i.l.bf16 %v1475_v57 }
 0x19e   :  { %v1910_v58 = vpop.permute.xlu0 %1484 }
 0x19f   :  { %v1912_v25 = vpop.permute.xlu1 %1479  ;;  %v1487_v29 = vunpack.i.h.bf16 %v1910_v58  ;;  %v1486_v6 = vunpack.i.l.bf16 %v1910_v58  ;;  %v1571_v58 = vld [vmem:[%s2096_s3 + $0x8] sm:$0xff]  }
 0x1a0   :  { %v1482_v8 = vunpack.i.h.bf16 %v1912_v25  ;;  %v1481_v9 = vunpack.i.l.bf16 %v1912_v25 }
 0x1a1   :  { %v629_v5 = vsel %vm625_vm6, %v1487_v29, %v1457_v19  ;;  %v628_v41 = vsel %vm625_vm6, %v1486_v6, %v1456_v34 }
 0x1a2   :  { %v1914_v35 = vpop.permute.xlu0 %1489 }
 0x1a3   :  { %v1500_v17 = vpop.permute.xlu1 %1499  ;;  %v1492_v42 = vunpack.i.h.bf16 %v1914_v35  ;;  %v1491_v49 = vunpack.i.l.bf16 %v1914_v35 }
 0x1a4   :  { %v1501_v47 = vunpack.i.l.bf16 %v1500_v17  ;;  %v1502_v38 = vunpack.i.h.bf16 %v1500_v17 }
 0x1a5   :  { %v609_v34 = vsel %vm605_vm7, %v1847_v16, %v1492_v42 }
 0x1a6   :  { %v606_v63 = vsel %vm605_vm7, %v1782_v24, %v1501_v47  ;;  %v1495_v0 = vpop.permute.xlu0 %1494  ;;  %v607_v10 = vsel %vm605_vm7, %v1868_v28, %v1502_v38 }
 0x1a7   :  { %v1497_v3 = vunpack.i.h.bf16 %v1495_v0  ;;  %v1496_v60 = vunpack.i.l.bf16 %v1495_v0  ;;  %v1505_v4 = vpop.permute.xlu1 %1504  ;;  %v611_v12 = vsel %vm610_vm9, %v606_v63, %v1461_v22  ;;  %v612_v23 = vsel %vm610_vm9, %v607_v10, %v1462_v48  ;;  %v1578_v10 = vld [vmem:[%s2096_s3 + $0x40] sm:$0xff]  }
 0x1a8   :  { %v1507_v15 = vunpack.i.h.bf16 %v1505_v4  ;;  %v1506_v18 = vunpack.i.l.bf16 %v1505_v4  ;;  %v608_v22 = vsel %vm605_vm7, %v1815_v56, %v1491_v49  ;;  %v647_v56 = vpack.c.bf16 %v1482_v8, %v1481_v9  ;;  %v1573_v4 = vld [vmem:[%s2096_s3 + $0x18] sm:$0xff]  }
 0x1a9   :  { %v626_v24 = vsel %vm625_vm6, %v1496_v60, %v1466_v62  ;;  %v627_v11 = vsel %vm625_vm6, %v1497_v3, %v1467_v61 }
 0x1aa   :  { %v631_v13 = vsel %vm630_vm8, %v626_v24, %v1471_v59  ;;  %v632_v14 = vsel %vm630_vm8, %v627_v11, %v1472_v37  ;;  %v1510_v20 = vpop.permute.xlu0 %1509  ;;  %v634_v44 = vsel %vm630_vm8, %v629_v5, %v1507_v15  ;;  %v633_v51 = vsel %vm630_vm8, %v628_v41, %v1506_v18  ;;  %v1574_v5 = vld [vmem:[%s2096_s3 + $0x20] sm:$0xff]   ;;  %v1579_v24 = vld [vmem:[%s2096_s3 + $0x48] sm:$0xff]   ;;  %v1580_v11 = vld [vmem:[%s2096_s3 + $0x50] sm:$0xff]  }
 0x1ab   :  { %v1512_v21 = vunpack.i.h.bf16 %v1510_v20  ;;  %v1511_v26 = vunpack.i.l.bf16 %v1510_v20  ;;  %v1520_v27 = vpop.permute.xlu1 %1519  ;;  %v636_v30 = vsel %vm635_vm11, %v631_v13, %v1476_v2  ;;  %v637_v31 = vsel %vm635_vm11, %v632_v14, %v1477_v1  ;;  %v1582_v13 = vld [vmem:[%s2096_s3 + $0x60] sm:$0xff]  }
 0x1ac   :  { %v1522_v32 = vunpack.i.h.bf16 %v1520_v27  ;;  %v641_v33 = vsel %vm640_vm12, %v636_v30, %v1481_v9  ;;  %v642_v36 = vsel %vm640_vm12, %v637_v31, %v1482_v8  ;;  %v1521_v28 = vunpack.i.l.bf16 %v1520_v27  ;;  %v1576_v8 = vld [vmem:[%s2096_s3 + $0x30] sm:$0xff]   ;;  %v1577_v9 = vld [vmem:[%s2096_s3 + $0x38] sm:$0xff]  }
 0x1ad   :  { %v616_v39 = vsel %vm615_vm10, %v611_v12, %v1511_v26  ;;  %v617_v40 = vsel %vm615_vm10, %v612_v23, %v1512_v21  ;;  %v646_v7 = vpack.c.bf16 %v642_v36, %v641_v33  ;;  %v1581_v12 = vld [vmem:[%s2096_s3 + $0x58] sm:$0xff]  }
 0x1ae   :  { %v1515_v43 = vpop.permute.xlu0 %1514  ;;  %v621_v45 = vsel %vm620_vm13, %v616_v39, %v1496_v60  ;;  %v622_v46 = vsel %vm620_vm13, %v617_v40, %v1497_v3  ;;  %v638_v17 = vsel %vm635_vm11, %v633_v51, %v1521_v28  ;;  %v639_v19 = vsel %vm635_vm11, %v634_v44, %v1522_v32  ;;  %v1570_v3 = vld [vmem:[%s2096_s3] sm:$0xff]   ;;  %v1583_v44 = vld [vmem:[%s2096_s3 + $0x68] sm:$0xff]  }
 0x1af   :  { %829 = vmatprep.mubr.bf16.mxu1 %v646_v7  ;;  %v1530_v52 = vpop.permute.xlu1 %1529  ;;  %v645_v53 = vpack.c.bf16 %v622_v46, %v621_v45  ;;  %v1517_v54 = vunpack.i.h.bf16 %v1515_v43  ;;  %v1516_v55 = vunpack.i.l.bf16 %v1515_v43  ;;  %v1617_v60 = vmov 0  }
 0x1b0   :  { %v1532_v57 = vunpack.i.h.bf16 %v1530_v52  ;;  %v1531_v25 = vunpack.i.l.bf16 %v1530_v52  ;;  %1058 = vmatprep.subr.bf16.mxu0 %v1617_v60  ;;  %v1254_v52 = vld [vmem:[%s2097_s4 + $0x1] ss:$0 sm:$0xff] }
 0x1b1   :  { %830 = vmatmul.mubr.bf16.vlgmr.msra.gmra.mrb[4].mxu1 %v645_v53  ;;  %v613_v61 = vsel %vm610_vm9, %v608_v22, %v1516_v55  ;;  %v614_v62 = vsel %vm610_vm9, %v609_v34, %v1517_v54  ;;  %1059 = vmatpush1.bf16.msra.mxu0 %v1570_v3  ;;  %v1584_v55 = vld [vmem:[%s2096_s3 + $0x70] sm:$0xff]  }
 0x1b2   :  { %1381 = vmatpush3.bf16.msra.mxu1 %v1894_v50  ;;  %v1525_v35 = vpop.permute.xlu0 %1524  ;;  %v643_v47 = vsel %vm640_vm12, %v638_v17, %v1531_v25  ;;  %v644_v48 = vsel %vm640_vm12, %v639_v19, %v1532_v57  ;;  %v650_v2 = vpack.c.bf16 %v1532_v57, %v1531_v25  ;;  %1060 = vmatprep.subr.bf16.mxu0 %v1617_v60  ;;  %v26_v19 = vld [vmem:[%s2097_s4 + $0x8] sm:$0xff]  ;;  %v27_v34 = vld [vmem:[%s2097_s4 + $0x10] sm:$0xff] }
 0x1b3   :  { %v1527_v37 = vunpack.i.h.bf16 %v1525_v35  ;;  %v1526_v38 = vunpack.i.l.bf16 %v1525_v35  ;;  %v649_v59 = vpack.c.bf16 %v644_v48, %v643_v47  ;;  %v28_v35 = vld [vmem:[%s2097_s4 + $0x18] sm:$0xff]  ;;  %v1618_v48 = vmov 0.0|0.0  }
 0x1b4   :  { %1415 = vmatprep.subr.bf16.mxu1 %v1618_v48  ;;  %v1416_v22 = vpack.c.bf16 %v27_v34, %v26_v19 }
 0x1b5   :  { %v618_v63 = vsel %vm615_vm10, %v613_v61, %v1526_v38  ;;  %v619_v16 = vsel %vm615_vm10, %v614_v62, %v1527_v37  ;;  %837 = vmatprep.mubr.bf16.mxu1 %v649_v59  ;;  %1061 = vmatpush1.bf16.msra.mxu0 %v1571_v58  ;;  %v29_v37 = vld [vmem:[%s2097_s4 + $0x20] sm:$0xff]  ;;  %v30_v61 = vld [vmem:[%s2097_s4 + $0x28] sm:$0xff]  ;;  %v31_v62 = vld [vmem:[%s2097_s4 + $0x30] sm:$0xff] }
 0x1b6   :  { %v623_v50 = vsel %vm620_vm13, %v618_v63, %v1486_v6  ;;  %v624_v0 = vsel %vm620_vm13, %v619_v16, %v1487_v29  ;;  %v1572_v29 = vld [vmem:[%s2096_s3 + $0x10] sm:$0xff]   ;;  %1062 = vmatprep.subr.bf16.mxu0 %v1617_v60  ;;  %v1575_v6 = vld [vmem:[%s2096_s3 + $0x28] sm:$0xff]   ;;  %v1419_v59 = vpack.c.bf16 %v29_v37, %v28_v35  ;;  %v1422_v16 = vpack.c.bf16 %v31_v62, %v30_v61 }
 0x1b7   :  { %v648_v1 = vpack.c.bf16 %v624_v0, %v623_v50  ;;  %v32_v50 = vld [vmem:[%s2097_s4 + $0x38] sm:$0xff]  ;;  %v33_v0 = vld [vmem:[%s2097_s4 + $0x40] sm:$0xff] }
 0x1b9   :  { %838 = vmatmul.mubr.bf16.gmra.mrb[8].mxu1 %v648_v1  ;;  %1063 = vmatpush1.bf16.msra.mxu0 %v1572_v29  ;;  %v1425_v1 = vpack.c.bf16 %v33_v0, %v32_v50 }
 0x1ba   :  { %1382 = vmatprep.mubr.msk.bf16.mxu1 %vm786_vm14, %v647_v56  ;;  %1064 = vmatprep.subr.bf16.mxu0 %v1617_v60  ;;  %v34_v56 = vld [vmem:[%s2097_s4 + $0x48] sm:$0xff] }
 0x1bd   :  { %1065 = vmatpush1.bf16.msra.mxu0 %v1573_v4 }
 0x1be   :  { %1066 = vmatprep.subr.bf16.mxu0 %v1617_v60 }
 0x1c1   :  { %1383 = vmatmul.mubr.msk.bf16.vlgmr.msra.gmra.mrb[12].mxu1 %vm786_vm14, %v650_v2  ;;  %1067 = vmatpush1.bf16.msra.mxu0 %v1574_v5  ;;  %v35_v2 = vld [vmem:[%s2097_s4 + $0x50] sm:$0xff] }
 0x1c2   :  { %1068 = vmatprep.subr.bf16.mxu0 %v1617_v60  ;;  %1417 = vmatpush3.bf16.msra.mxu1 %v1416_v22  ;;  %v1428_v3 = vpack.c.bf16 %v35_v2, %v34_v56 }
 0x1c3   :  { %1418 = vmatprep.subr.bf16.mxu1 %v1618_v48 }
 0x1c5   :  { %1069 = vmatpush1.bf16.msra.mxu0 %v1575_v6 }
 0x1c6   :  { %1070 = vmatprep.subr.bf16.mxu0 %v1617_v60  ;;  %1420 = vmatpush3.bf16.msra.mxu1 %v1419_v59 }
 0x1c7   :  { %1421 = vmatprep.subr.bf16.mxu1 %v1618_v48 }
 0x1c9   :  { %1071 = vmatpush1.bf16.msra.mxu0 %v1576_v8 }
 0x1ca   :  { %1072 = vmatprep.subr.bf16.mxu0 %v1617_v60  ;;  %1423 = vmatpush3.bf16.msra.mxu1 %v1422_v16 }
 0x1cb   :  { %1424 = vmatprep.subr.bf16.mxu1 %v1618_v48 }
 0x1cd   :  { %1073 = vmatpush1.bf16.msra.mxu0 %v1577_v9 }
 0x1ce   :  { %1074 = vmatprep.subr.bf16.mxu0 %v1617_v60  ;;  %1426 = vmatpush3.bf16.msra.mxu1 %v1425_v1 }
 0x1cf   :  { %1427 = vmatprep.subr.bf16.mxu1 %v1618_v48 }
 0x1d1   :  { %1075 = vmatpush1.bf16.msra.mxu0 %v1578_v10  ;;  %v36_v10 = vld [vmem:[%s2097_s4 + $0x58] sm:$0xff] }
 0x1d2   :  { %1076 = vmatprep.subr.bf16.mxu0 %v1617_v60  ;;  %1429 = vmatpush3.bf16.msra.mxu1 %v1428_v3 }
 0x1d3   :  { %1430 = vmatprep.subr.bf16.mxu1 %v1618_v48 }
 0x1d5   :  { %1077 = vmatpush1.bf16.msra.mxu0 %v1579_v24  ;;  %v37_v24 = vld [vmem:[%s2097_s4 + $0x60] sm:$0xff] }
 0x1d6   :  { %1078 = vmatprep.subr.bf16.mxu0 %v1617_v60 }
 0x1d9   :  { %1079 = vmatpush1.bf16.msra.mxu0 %v1580_v11  ;;  %v1431_v11 = vpack.c.bf16 %v37_v24, %v36_v10 }
 0x1da   :  { %1080 = vmatprep.subr.bf16.mxu0 %v1617_v60 }
 0x1db   :  { %1432 = vmatpush3.bf16.msra.mxu1 %v1431_v11 }
 0x1dd   :  { %1081 = vmatpush1.bf16.msra.mxu0 %v1581_v12  ;;  %v1620_v12 = vmov 0.0  }
 0x1de   :  { %1082 = vmatprep.subr.bf16.mxu0 %v1617_v60  ;;  %1412 = vmatprep.mubr.msk.f32.mxu1 %vm1619_vm15, %v1620_v12 }
 0x1df   :  { %1410 = vmatprep.subr.mxu1 %v1620_v12 }
 0x1e1   :  { %1083 = vmatpush1.bf16.msra.mxu0 %v1582_v13  ;;  %v38_v13 = vld [vmem:[%s2097_s4 + $0x68] sm:$0xf] }
 0x1e2   :  { %1084 = vmatprep.subr.bf16.mxu0 %v1617_v60  ;;  %1411 = vmatpush3.msk.msra.mxu1 %vm464_vm2, %v38_v13 }
 0x1e5   :  { %1085 = vmatpush1.bf16.msra.mxu0 %v1583_v44 }
 0x1e6   :  { %1086 = vmatprep.subr.bf16.mxu0 %v1617_v60 }
 0x1e9   :  { %1087 = vmatpush1.bf16.msra.mxu0 %v1584_v55 }
 0x284   :  { %v1311_v14 = vpop.f32.mrb[4].mxu1 }
 0x285   :  { %v1312_v15 = vpop.f32.mrb[5].mxu1 }
 0x286   :  { %v1313_v18 = vadd.f32 %v1312_v15, %v1311_v14  ;;  %v1314_v20 = vpop.f32.mrb[6].mxu1  ;;  %v1255_v14 = vld [vmem:[%s2097_s4 + $0x2] ss:$0 sm:$0xff] }
 0x287   :  { %v1315_v21 = vpop.f32.mrb[7].mxu1 }
 0x288   :  { %v1316_v26 = vadd.f32 %v1315_v21, %v1314_v20 }
 0x28c   :  { %v1317_v27 = vpop.f32.mrb[8].mxu1 }
 0x28d   :  { %v1318_v30 = vpop.f32.mrb[9].mxu1 }
 0x28e   :  { %v1319_v31 = vadd.f32 %v1318_v30, %v1317_v27  ;;  %v1320_v23 = vpop.f32.mrb[10].mxu1  ;;  %v1272_v30 = vld [vmem:[%s2097_s4 + $0x3] ss:$0 sm:$0xff] }
 0x28f   :  { %v1321_v32 = vpop.f32.mrb[11].mxu1 }
 0x290   :  { %v1322_v33 = vadd.f32 %v1321_v32, %v1320_v23 }
 0x294   :  { %v1384_v36 = vpop.f32.mrb[12].mxu1 }
 0x295   :  { %v889_v39 = vadd.f32 %v1384_v36, %v1319_v31  ;;  %v880_v40 = vpop.f32.mrb[13].mxu1 }
 0x296   :  { %v881_v28 = vadd.f32 %v1313_v18, %v880_v40  ;;  %v1385_v7 = vpop.f32.mrb[14].mxu1 }
 0x297   :  { %v892_v41 = vadd.f32 %v1385_v7, %v1322_v33  ;;  %v883_v42 = vpop.f32.mrb[15].mxu1 }
 0x298   :  { %v884_v43 = vadd.f32 %v1316_v26, %v883_v42 }
 0x299   :  { %v896_v45 = vmax.f32 %v889_v39, %v892_v41 }
 0x29a   :  { %v895_v46 = vmax.f32 %v881_v28, %v884_v43 }
 0x29b   :  { %v902_v49 = vrot.slane %v896_v45, 2 }
 0x29c   :  { %v898_v51 = vrot.slane %v895_v46, 2 }
 0x29d   :  { %v904_v53 = vmax.f32 %v896_v45, %v902_v49 }
 0x29e   :  { %v900_v54 = vmax.f32 %v895_v46, %v898_v51 }
 0x29f   :  { %v911_v57 = vadd.f32 %v1254_v52, %v904_v53 }
 0x2a0   :  { %v909_v25 = vadd.f32 %v1254_v52, %v900_v54 }
 0x2a1   :  { %v912_v17 = vmax.f32 %v911_v57, 0.0 }
 0x2a2   :  { %v910_v47 = vmax.f32 %v909_v25, 0.0 }
 0x2a3   :  { %919 = vrot.lane.b32.xlu1 %v912_v17, %s1613_s12  ;;  %v922_v63 = vrot.slane %v912_v17, 4 }
 0x2a4   :  { %v914_v38 = vrot.slane %v910_v47, 4 }
 0x2a6   :  { %915 = vrot.lane.b32.xlu0 %v914_v38, %s1610_s27 }
 0x2aa   :  { %923 = vrot.lane.b32.xlu0 %v922_v63, %s1611_s28 }
 0x315   :  { %v920_v29 = vpop.permute.xlu1 %919 }
 0x318   :  { %v916_v60 = vpop.permute.xlu0 %915 }
 0x319   :  { %v926_v58 = vsel %vm610_vm9, %v910_v47, %v916_v60 }
 0x31a   :  { %v927_v4 = vsel %vm620_vm13, %v926_v58, %v920_v29 }
 0x31b   :  { %v929_v9 = vpack.c.bf16 %v927_v4, %v927_v4 }
 0x31c   :  { %v924_v5 = vpop.permute.xlu0 %923 }
 0x31d   :  { %v928_v6 = vsel %vm630_vm8, %v920_v29, %v924_v5 }
 0x31e   :  { %v930_v8 = vpack.c.bf16 %v928_v6, %v928_v6 }
 0x320   :  { %1271 = vmatprep.mubr.msk.bf16.mxu0 %vm640_vm12, %v930_v8 }
 0x321   :  { %1091 = vmatmul.mubr.bf16.vlgmr.msra.gmra.mrb[32].mxu0 %v929_v9 }
 0x3f4   :  { %v1092_v15 = vpop.f32.mrb[32].mxu0 }
 0x3f5   :  { %v1093_v18 = vadd.f32 %v1255_v14, %v1092_v15  ;;  %v1094_v20 = vpop.f32.mrb[33].mxu0 }
 0x3f6   :  { %v1095_v21 = vpop.f32.mrb[34].mxu0 }
 0x3f7   :  { %v1098_v26 = vmax.f32 %v1093_v18, 0.0  ;;  %v1096_v27 = vpop.f32.mrb[35].mxu0 }
 0x3f9   :  { %1413 = vmatmul.mubr.msk.f32.vlgmr.msra.gmra.mrb[16].mxu1 %vm1103_vm0, %v1098_v26 }
 0x4cc   :  { %v1176_v31 = vpop.f32.mrb[16].mxu1 }
 0x4cd   :  { %v1177_v23 = vadd.f32 %v1272_v30, %v1176_v31  ;;  %v1414_v32 = vpop.f32.mrb[17].mxu1 }
 0x4cf   :  { %1181 = vst.msk [vmem:[#allocation2] sm:$0x3] %vm1180_vm1, %v1177_v23 }
 0x4d0   :  { %1596 = shalt.err (!%p1593_p4)
}
 0x4d1   :  { %s1597_s3 = scalar_lea.hbm %s2098_s5, 32 }
 0x4d2   :  { %p1598_p5 = scmp.ne.s32.totalorder %s2098_s5, %s1597_s3  ;;  %p1601_p6 = scmp.lt.u32.totalorder %s1597_s3, %s2098_s5 }
 0x4d4   :  { %p1603_p7 = pnand %p1601_p6, %p1598_p5 }
 0x4d6   :  { %1606 = shalt.err (!%p1603_p7)
}
 0x4d7   :  { %1191 = dma.vmem_to_hbm [thread:$0]  %s1189_s6, 32, %s2098_s5, [#allocation3]  }
 0x4d8   :  { %1607 = dma.done.wait [#allocation3], 32  }
 0x4d9   :  { %1608 = vsyncadd [#allocation3], 4294967264 }
 0x4da   :  { %1195 = vsyncpa [#allocation3], 1 }

</bundles_post_ra>
